<compile_context>
chip_gen: v7x
topology: tpu7x:2x2x1
jax: 0.10.0
libtpu: 0.0.40
codegen_flags: <defaults>
</compile_context>

<pallas_src>
import functools
import math

import jax
import jax.numpy as jnp
from jax.experimental import pallas as pl
from jax.experimental.pallas import tpu as pltpu


# ------------------------------ tiling utils -------------------------------

def _round_up(x, m):
    return ((x + m - 1) // m) * m


def _pick_tile(dim, align, candidates):
    """Largest candidate tile dividing the (padded-to-align) dim."""
    dp = _round_up(dim, align)
    for c in candidates:
        if c <= dp and dp % c == 0:
            return c, dp
    c = min(candidates)
    return c, _round_up(dp, c)


_M_TILES = (512, 256, 128, 64, 32, 16, 8)          # sublane-axis tiles
_LANE_TILES = (1024, 768, 512, 384, 256, 128)      # lane-axis tiles (128-mult)

_VMEM_LIMIT = 48 * 1024 * 1024                      # fits v7x's 64 MiB VMEM


# --------------------------- tiled linear kernel ---------------------------

def _linear_kernel(x_ref, w_ref, b_ref, o_ref, acc_ref, *, activation):
    @pl.when(pl.program_id(2) == 0)
    def _():
        acc_ref[...] = jnp.zeros_like(acc_ref)

    acc_ref[...] += jnp.dot(x_ref[...], w_ref[...],
                            preferred_element_type=jnp.float32)

    @pl.when(pl.program_id(2) == pl.num_programs(2) - 1)
    def _():
        y = acc_ref[...] + b_ref[...]
        if activation == "gelu":
            y = jax.nn.gelu(y, approximate=True)
        o_ref[...] = y.astype(o_ref.dtype)


def linear(x, w, b, activation=None, out_dtype=jnp.bfloat16):
    """y = act(x @ w + b).  x: (M, K), w: (K, N), b: (N,).  bf16 MXU / f32 acc.

    Weights are expected pre-padded/pre-cast (prepare_params); the pad branch
    below is a no-op on that path.
    """
    M, K = x.shape
    N = w.shape[1]
    tm, Mp = _pick_tile(M, 8, _M_TILES)
    tn, Np = _pick_tile(N, 128, _LANE_TILES)
    tk, Kp = _pick_tile(K, 128, _LANE_TILES)

    xp = x if (Mp == M and Kp == K) else jnp.pad(x, ((0, Mp - M), (0, Kp - K)))
    wp = w if (Kp == K and Np == N) else jnp.pad(w, ((0, Kp - K), (0, Np - N)))
    bp = b if Np == N else jnp.pad(b, (0, Np - N))
    xp = xp.astype(jnp.bfloat16)
    wp = wp.astype(jnp.bfloat16)
    bp = bp.reshape(1, Np).astype(jnp.float32)

    out = pl.pallas_call(
        functools.partial(_linear_kernel, activation=activation),
        out_shape=jax.ShapeDtypeStruct((Mp, Np), out_dtype),
        grid=(Mp // tm, Np // tn, Kp // tk),
        in_specs=[
            pl.BlockSpec((tm, tk), lambda i, j, k: (i, k)),
            pl.BlockSpec((tk, tn), lambda i, j, k: (k, j)),
            pl.BlockSpec((1, tn), lambda i, j, k: (0, j)),
        ],
        out_specs=pl.BlockSpec((tm, tn), lambda i, j, k: (i, j)),
        scratch_shapes=[pltpu.VMEM((tm, tn), jnp.float32)],
        compiler_params=pltpu.CompilerParams(
            dimension_semantics=("parallel", "parallel", "arbitrary"),
            vmem_limit_bytes=_VMEM_LIMIT),
    )(xp, wp, bp)

    if Mp != M or Np != N:
        out = out[:M, :N]
    return out


# -------------------- linear + residual + LayerNorm fused ------------------

def _linear_res_ln_kernel(x_ref, w_ref, b_ref, r_ref, g_ref, beta_ref,
                          o_ref, acc_ref, *, eps):
    @pl.when(pl.program_id(1) == 0)
    def _():
        acc_ref[...] = jnp.zeros_like(acc_ref)

    acc_ref[...] += jnp.dot(x_ref[...], w_ref[...],
                            preferred_element_type=jnp.float32)

    @pl.when(pl.program_id(1) == pl.num_programs(1) - 1)
    def _():
        y = acc_ref[...] + b_ref[...] + r_ref[...].astype(jnp.float32)
        mean = jnp.mean(y, axis=-1, keepdims=True)
        var = jnp.mean(jnp.square(y - mean), axis=-1, keepdims=True)
        yn = (y - mean) * jax.lax.rsqrt(var + eps)
        o_ref[...] = (yn * g_ref[...] + beta_ref[...]).astype(o_ref.dtype)


def linear_res_ln(x, w, b, residual, g, beta, eps=1e-12,
                  out_dtype=jnp.bfloat16):
    """LN(x @ w + b + residual) * g + beta, fused in the matmul epilogue.

    Requires the full output width N to fit a single lane tile (N % 128 == 0,
    N <= 2048); otherwise falls back to separate linear + layernorm.
    """
    M, K = x.shape
    N = w.shape[1]
    if N % 128 != 0 or N > 2048:
        y = linear(x, w, b, out_dtype=out_dtype)
        return layernorm(y, g, beta, residual=residual, eps=eps,
                         out_dtype=out_dtype)

    tm, Mp = _pick_tile(M, 8, _M_TILES)
    tk, Kp = _pick_tile(K, 128, _LANE_TILES)

    pad_m = Mp != M
    xp = jnp.pad(x, ((0, Mp - M), (0, 0))) if pad_m else x
    rp = jnp.pad(residual, ((0, Mp - M), (0, 0))) if pad_m else residual
    wp = w
    if Kp != K:
        xp = jnp.pad(xp, ((0, 0), (0, Kp - K)))
        wp = jnp.pad(wp, ((0, Kp - K), (0, 0)))
    xp = xp.astype(jnp.bfloat16)
    rp = rp.astype(jnp.bfloat16)
    wp = wp.astype(jnp.bfloat16)
    bp = b.reshape(1, N).astype(jnp.float32)
    gp = g.reshape(1, N).astype(jnp.float32)
    betap = beta.reshape(1, N).astype(jnp.float32)

    out = pl.pallas_call(
        functools.partial(_linear_res_ln_kernel, eps=eps),
        out_shape=jax.ShapeDtypeStruct((Mp, N), out_dtype),
        grid=(Mp // tm, Kp // tk),
        in_specs=[
            pl.BlockSpec((tm, tk), lambda i, k: (i, k)),
            pl.BlockSpec((tk, N), lambda i, k: (k, 0)),
            pl.BlockSpec((1, N), lambda i, k: (0, 0)),
            pl.BlockSpec((tm, N), lambda i, k: (i, 0)),
            pl.BlockSpec((1, N), lambda i, k: (0, 0)),
            pl.BlockSpec((1, N), lambda i, k: (0, 0)),
        ],
        out_specs=pl.BlockSpec((tm, N), lambda i, k: (i, 0)),
        scratch_shapes=[pltpu.VMEM((tm, N), jnp.float32)],
        compiler_params=pltpu.CompilerParams(
            dimension_semantics=("parallel", "arbitrary"),
            vmem_limit_bytes=_VMEM_LIMIT),
    )(xp, wp, bp, rp, gp, betap)
    return out[:M] if pad_m else out


# ---------------------- layernorm (+ optional residual) --------------------

def _ln_kernel(*refs, eps, has_residual):
    if has_residual:
        x_ref, r_ref, g_ref, b_ref, o_ref = refs
        x = x_ref[...].astype(jnp.float32) + r_ref[...].astype(jnp.float32)
    else:
        x_ref, g_ref, b_ref, o_ref = refs
        x = x_ref[...].astype(jnp.float32)
    mean = jnp.mean(x, axis=-1, keepdims=True)
    var = jnp.mean(jnp.square(x - mean), axis=-1, keepdims=True)
    y = (x - mean) * jax.lax.rsqrt(var + eps)
    o_ref[...] = (y * g_ref[...] + b_ref[...]).astype(o_ref.dtype)


def layernorm(x, g, b, residual=None, eps=1e-12, out_dtype=jnp.bfloat16):
    """LN(x + residual) over the last dim; row-tiled."""
    M, H = x.shape
    tm, Mp = _pick_tile(M, 8, _M_TILES)
    pad = Mp != M

    args = [jnp.pad(x, ((0, Mp - M), (0, 0))) if pad else x]
    if residual is not None:
        args.append(jnp.pad(residual, ((0, Mp - M), (0, 0))) if pad else residual)
    args += [g.reshape(1, H).astype(jnp.float32),
             b.reshape(1, H).astype(jnp.float32)]

    row_spec = pl.BlockSpec((tm, H), lambda i: (i, 0))
    gb_spec = pl.BlockSpec((1, H), lambda i: (0, 0))
    in_specs = [row_spec] * (len(args) - 2) + [gb_spec, gb_spec]

    out = pl.pallas_call(
        functools.partial(_ln_kernel, eps=eps,
                          has_residual=residual is not None),
        out_shape=jax.ShapeDtypeStruct((Mp, H), out_dtype),
        grid=(Mp // tm,),
        in_specs=in_specs,
        out_specs=row_spec,
        compiler_params=pltpu.CompilerParams(
            dimension_semantics=("parallel",)),
    )(*args)
    return out[:M] if pad else out


# ----------------------- flash-style multi-head attention ------------------

def _attn_kernel(lens_ref, q_ref, k_ref, v_ref, m_ref, o_ref,
                 m_sc, l_sc, acc_sc, *, n_heads, d):
    b = pl.program_id(0)
    ki = pl.program_id(2)
    tq = q_ref.shape[0]
    tkv = k_ref.shape[0]

    @pl.when(ki == 0)
    def _():
        m_sc[...] = jnp.full_like(m_sc, -1e30)
        l_sc[...] = jnp.zeros_like(l_sc)
        acc_sc[...] = jnp.zeros_like(acc_sc)

    # Skip kv blocks that contain only padding keys for this batch element.
    @pl.when(ki * tkv < lens_ref[b])
    def _():
        mask = m_ref[...].astype(jnp.float32)              # (1, tkv) additive

        for h in range(n_heads):
            lo, hi = h * d, (h + 1) * d
            q = q_ref[:, lo:hi]                            # (tq,  d) bf16
            k = k_ref[:, lo:hi]                            # (tkv, d) bf16
            v = v_ref[:, lo:hi]                            # (tkv, d) bf16
            # 1/sqrt(d) is pre-folded into Wq/bq (prepare_params).
            s = jax.lax.dot_general(q, k, (((1,), (1,)), ((), ())),
                                    preferred_element_type=jnp.float32)
            s = s + mask                                   # (tq, tkv) f32

            m_prev = m_sc[h]                               # (tq, 1)
            m_new = jnp.maximum(m_prev, jnp.max(s, axis=-1, keepdims=True))
            alpha = jnp.exp(m_prev - m_new)
            p = jnp.exp(s - m_new)
            l_sc[h] = alpha * l_sc[h] + jnp.sum(p, axis=-1, keepdims=True)
            acc_sc[:, lo:hi] = alpha * acc_sc[:, lo:hi] + jnp.dot(
                p.astype(jnp.bfloat16), v, preferred_element_type=jnp.float32)
            m_sc[h] = m_new

    @pl.when(ki == pl.num_programs(2) - 1)
    def _():
        # Build the full (tq, H) slab and store it with ONE lane-dense write.
        parts = []
        for h in range(n_heads):
            inv_l = pl.reciprocal(l_sc[h], approx=True)    # (tq, 1)
            parts.append(acc_sc[:, h * d:(h + 1) * d] * inv_l)
        o_ref[...] = jnp.concatenate(parts, axis=-1).astype(o_ref.dtype)


def attention(qkv, add_mask, seq_lens, n_heads, *, block):
    """qkv: (B, Sp, 3H) fused Q|K|V; add_mask: (B, 1, Sp) additive (0 / -1e9);
    seq_lens: (B,) int32 valid-key counts (scalar-prefetched)."""
    B, Sp, H3 = qkv.shape
    H = H3 // 3
    d = H // n_heads
    t = block
    assert Sp % t == 0

    qkv = qkv.astype(jnp.bfloat16)
    add_mask = add_mask.astype(jnp.float32)
    seq_lens = seq_lens.astype(jnp.int32)

    out = pl.pallas_call(
        functools.partial(_attn_kernel, n_heads=n_heads, d=d),
        out_shape=jax.ShapeDtypeStruct((B, Sp, H), jnp.bfloat16),
        grid_spec=pltpu.PrefetchScalarGridSpec(
            num_scalar_prefetch=1,
            grid=(B, Sp // t, Sp // t),
            in_specs=[
                pl.BlockSpec((None, t, H), lambda b, qi, ki, lens: (b, qi, 0)),  # Q
                pl.BlockSpec((None, t, H), lambda b, qi, ki, lens: (b, ki, 1)),  # K
                pl.BlockSpec((None, t, H), lambda b, qi, ki, lens: (b, ki, 2)),  # V
                pl.BlockSpec((None, 1, t), lambda b, qi, ki, lens: (b, 0, ki)),  # mask
            ],
            out_specs=pl.BlockSpec((None, t, H), lambda b, qi, ki, lens: (b, qi, 0)),
            scratch_shapes=[
                pltpu.VMEM((n_heads, t, 1), jnp.float32),   # running max
                pltpu.VMEM((n_heads, t, 1), jnp.float32),   # running sum
                pltpu.VMEM((t, H), jnp.float32),            # lane-dense accumulator
            ]),
        compiler_params=pltpu.CompilerParams(
            dimension_semantics=("parallel", "parallel", "arbitrary"),
            vmem_limit_bytes=_VMEM_LIMIT),
    )(seq_lens, qkv, qkv, qkv, add_mask)
    return out


# ---------------------------- parameter setup ------------------------------

def init_params(key, *, vocab, max_pos, type_vocab, hidden, n_layers,
                inter, class_num):
    """Reference-style f32 parameters."""
    def norm(k, shape):
        return 0.02 * jax.random.normal(k, shape, jnp.float32)

    keys = iter(jax.random.split(key, 4 + n_layers * 4))
    p = {
        "word_emb": norm(next(keys), (vocab, hidden)),
        "pos_emb": norm(next(keys), (max_pos, hidden)),
        "type_emb": norm(next(keys), (type_vocab, hidden)),
        "emb_ln_g": jnp.ones((hidden,), jnp.float32),
        "emb_ln_b": jnp.zeros((hidden,), jnp.float32),
        "cls_w": norm(next(keys), (hidden, class_num)),
        "cls_b": jnp.zeros((class_num,), jnp.float32),
        "layers": [],
    }
    for _ in range(n_layers):
        p["layers"].append({
            # fused Q|K|V projection (one (H, 3H) matmul)
            "w_qkv": norm(next(keys), (hidden, 3 * hidden)),
            "b_qkv": jnp.zeros((3 * hidden,), jnp.float32),
            "wo": norm(next(keys), (hidden, hidden)),
            "bo": jnp.zeros((hidden,), jnp.float32),
            "ln1_g": jnp.ones((hidden,), jnp.float32),
            "ln1_b": jnp.zeros((hidden,), jnp.float32),
            "w1": norm(next(keys), (hidden, inter)),
            "b1": jnp.zeros((inter,), jnp.float32),
            "w2": norm(next(keys), (inter, hidden)),
            "b2": jnp.zeros((hidden,), jnp.float32),
            "ln2_g": jnp.ones((hidden,), jnp.float32),
            "ln2_b": jnp.zeros((hidden,), jnp.float32),
        })
    return p


def prepare_params(params, n_heads):
    """One-time kernel prep: bf16 weight casts, 1/sqrt(d) folded into Wq/bq,
    classifier padded to a 128-lane multiple.  No per-call pads remain."""
    H = params["word_emb"].shape[1]
    d = H // n_heads
    scale = 1.0 / math.sqrt(d)

    cn = params["cls_w"].shape[1]
    cnp = _round_up(cn, 128)
    p = {
        "word_emb": params["word_emb"],
        "pos_emb": params["pos_emb"],
        "type_emb": params["type_emb"],
        "emb_ln_g": params["emb_ln_g"],
        "emb_ln_b": params["emb_ln_b"],
        "cls_w": jnp.pad(params["cls_w"],
                         ((0, 0), (0, cnp - cn))).astype(jnp.bfloat16),
        "cls_b": jnp.pad(params["cls_b"], (0, cnp - cn)).astype(jnp.float32),
        "class_num": cn,
        "layers": [],
    }
    for lyr in params["layers"]:
        w_qkv = lyr["w_qkv"].at[:, :H].multiply(scale)     # fold softmax scale
        b_qkv = lyr["b_qkv"].at[:H].multiply(scale)
        p["layers"].append({
            "w_qkv": w_qkv.astype(jnp.bfloat16),
            "b_qkv": b_qkv.astype(jnp.float32),
            "wo": lyr["wo"].astype(jnp.bfloat16),
            "bo": lyr["bo"].astype(jnp.float32),
            "ln1_g": lyr["ln1_g"], "ln1_b": lyr["ln1_b"],
            "w1": lyr["w1"].astype(jnp.bfloat16),
            "b1": lyr["b1"].astype(jnp.float32),
            "w2": lyr["w2"].astype(jnp.bfloat16),
            "b2": lyr["b2"].astype(jnp.float32),
            "ln2_g": lyr["ln2_g"], "ln2_b": lyr["ln2_b"],
        })
    return p


# -------------------------------- forward ----------------------------------

def torch_model_forward(params, input_ids, attention_mask, *, n_heads):
    B, S = input_ids.shape
    H = params["word_emb"].shape[1]
    class_num = params["class_num"]

    # Attention block size: up to 256 to fill the 256-wide MXU on v6e/v7x.
    t = min(256, _round_up(S, 8))
    Sp = _round_up(S, t)
    M = B * Sp

    # BERT embeddings (gather stays in plain JAX, LN in Pallas).
    x = (jnp.take(params["word_emb"], input_ids, axis=0)
         + params["pos_emb"][:S][None, :, :]
         + params["type_emb"][0][None, None, :])
    if Sp != S:                                   # pad sequence ONCE, up front
        x = jnp.pad(x, ((0, 0), (0, Sp - S), (0, 0)))
        am = jnp.pad(attention_mask, ((0, 0), (0, Sp - S)))
    else:
        am = attention_mask
    xf = layernorm(x.reshape(M, H), params["emb_ln_g"], params["emb_ln_b"])

    add_mask = ((1.0 - am.astype(jnp.float32)) * -1e9).reshape(B, 1, Sp)
    seq_lens = jnp.sum(attention_mask.astype(jnp.int32), axis=-1)   # (B,)

    # BERT encoder layers.
    for lyr in params["layers"]:
        qkv = linear(xf, lyr["w_qkv"], lyr["b_qkv"])                # (M, 3H)
        ctx = attention(qkv.reshape(B, Sp, 3 * H), add_mask, seq_lens,
                        n_heads, block=t)                           # (B, Sp, H)
        # wo-projection with fused residual-add + LayerNorm epilogue.
        x1 = linear_res_ln(ctx.reshape(M, H), lyr["wo"], lyr["bo"],
                           xf, lyr["ln1_g"], lyr["ln1_b"])
        ff = linear(x1, lyr["w1"], lyr["b1"], activation="gelu")
        # w2-projection with fused residual-add + LayerNorm epilogue.
        xf = linear_res_ln(ff, lyr["w2"], lyr["b2"],
                           x1, lyr["ln2_g"], lyr["ln2_b"])

    # self.classify: Linear(hidden_size, class_num); N padded to 128 lanes
    # once in prepare_params, sliced back here.
    logits = linear(xf, params["cls_w"], params["cls_b"],
                    out_dtype=jnp.float32)
    logits = logits[:, :class_num].reshape(B, Sp, class_num)
    return logits[:, :S]


# ---------------------------------- main ------------------------------------

if __name__ == "__main__":
    B, S, H = 2, 8, 128
    n_heads, inter, n_layers = 4, 512, 2
    class_num, vocab, max_pos = 9, 30, 16

    key = jax.random.PRNGKey(0)
    pkey, ikey = jax.random.split(key)
    ref_params = init_params(pkey, vocab=vocab, max_pos=max_pos, type_vocab=2,
                             hidden=H, n_layers=n_layers, inter=inter,
                             class_num=class_num)
    params = prepare_params(ref_params, n_heads)

    input_ids = jax.random.randint(ikey, (B, S), 0, vocab, dtype=jnp.int32)
    attention_mask = jnp.ones((B, S), jnp.int32).at[1, 6:].set(0)

    # target=None, use_crf=False  ->  return predict (per-token logits)
    predict = torch_model_forward(params, input_ids, attention_mask,
                                  n_heads=n_heads)
    jax.block_until_ready(predict)
    assert predict.shape == (B, S, class_num)
    assert predict.dtype == jnp.float32
    print("KERNEL_OK")
</pallas_src>

<mosaic_0001>
module attributes {stable_mosaic.version = 11 : i64} {
  func.func @_ln_kernel(%arg0: i32, %arg1: memref<16x128xf32, #tpu.memory_space<vmem>>, %arg2: memref<1x128xf32, #tpu.memory_space<vmem>>, %arg3: memref<1x128xf32, #tpu.memory_space<vmem>>, %arg4: memref<16x128xbf16, #tpu.memory_space<vmem>>) attributes {dimension_semantics = [#tpu.dimension_semantics<parallel>], iteration_bounds = array<i64: 1>, scalar_prefetch = 0 : i64, scratch_operands = 0 : i64, tpu.core_type = #tpu.core_type<tc>, window_params = [{transform_indices = @transform_0, window_bounds = array<i64: 16, 128>}, {pipeline_mode = #tpu.pipeline_mode<synchronous>, transform_indices = @transform_1, window_bounds = array<i64: 1, 128>}, {pipeline_mode = #tpu.pipeline_mode<synchronous>, transform_indices = @transform_2, window_bounds = array<i64: 1, 128>}, {transform_indices = @transform_3, window_bounds = array<i64: 16, 128>}]} {
    %c0 = arith.constant 0 : index
    %c0_0 = arith.constant 0 : index
    %0 = vector.load %arg1[%c0, %c0_0] : memref<16x128xf32, #tpu.memory_space<vmem>>, vector<16x128xf32>
    %cst = arith.constant dense<0.000000e+00> : vector<16xf32>
    %1 = vector.multi_reduction <add>, %0, %cst [1] : vector<16x128xf32> to vector<16xf32>
    %2 = vector.shape_cast %1 : vector<16xf32> to vector<16x1xf32>
    %cst_1 = arith.constant 1.280000e+02 : f32
    %3 = vector.broadcast %cst_1 : f32 to vector<16x1xf32>
    %4 = arith.divf %2, %3 : vector<16x1xf32>
    %5 = vector.broadcast %4 : vector<16x1xf32> to vector<16x128xf32>
    %6 = arith.subf %0, %5 : vector<16x128xf32>
    %7 = arith.mulf %6, %6 : vector<16x128xf32>
    %cst_2 = arith.constant dense<0.000000e+00> : vector<16xf32>
    %8 = vector.multi_reduction <add>, %7, %cst_2 [1] : vector<16x128xf32> to vector<16xf32>
    %9 = vector.shape_cast %8 : vector<16xf32> to vector<16x1xf32>
    %cst_3 = arith.constant 1.280000e+02 : f32
    %10 = vector.broadcast %cst_3 : f32 to vector<16x1xf32>
    %11 = arith.divf %9, %10 : vector<16x1xf32>
    %12 = vector.broadcast %4 : vector<16x1xf32> to vector<16x128xf32>
    %13 = arith.subf %0, %12 : vector<16x128xf32>
    %cst_4 = arith.constant 9.99999996E-13 : f32
    %14 = vector.broadcast %cst_4 : f32 to vector<16x1xf32>
    %15 = arith.addf %11, %14 : vector<16x1xf32>
    %16 = math.rsqrt %15 : vector<16x1xf32>
    %17 = vector.broadcast %16 : vector<16x1xf32> to vector<16x128xf32>
    %18 = arith.mulf %13, %17 : vector<16x128xf32>
    %c0_5 = arith.constant 0 : index
    %c0_6 = arith.constant 0 : index
    %19 = vector.load %arg2[%c0_5, %c0_6] : memref<1x128xf32, #tpu.memory_space<vmem>>, vector<1x128xf32>
    %20 = vector.broadcast %19 : vector<1x128xf32> to vector<16x128xf32>
    %21 = arith.mulf %18, %20 : vector<16x128xf32>
    %c0_7 = arith.constant 0 : index
    %c0_8 = arith.constant 0 : index
    %22 = vector.load %arg3[%c0_7, %c0_8] : memref<1x128xf32, #tpu.memory_space<vmem>>, vector<1x128xf32>
    %23 = vector.broadcast %22 : vector<1x128xf32> to vector<16x128xf32>
    %24 = arith.addf %21, %23 : vector<16x128xf32>
    %25 = arith.truncf %24 : vector<16x128xf32> to vector<16x128xbf16>
    %c0_9 = arith.constant 0 : index
    %c0_10 = arith.constant 0 : index
    %26 = vector.load %arg4[%c0_9, %c0_10] : memref<16x128xbf16, #tpu.memory_space<vmem>>, vector<16x128xbf16>
    tpu.vector_store %arg4[%c0_9, %c0_10], %25 {strides = array<i32>} : memref<16x128xbf16, #tpu.memory_space<vmem>>, vector<16x128xbf16>,
    return
  }
  func.func @transform_0(%arg0: i32) -> (i32, i32) {
    %c0_i32 = arith.constant 0 : i32
    %c0_i32_0 = arith.constant 0 : i32
    return %arg0, %c0_i32 : i32, i32
  }
  func.func @transform_1(%arg0: i32) -> (i32, i32) {
    %c0_i32 = arith.constant 0 : i32
    %c0_i32_0 = arith.constant 0 : i32
    %c0_i32_1 = arith.constant 0 : i32
    return %c0_i32, %c0_i32_0 : i32, i32
  }
  func.func @transform_2(%arg0: i32) -> (i32, i32) {
    %c0_i32 = arith.constant 0 : i32
    %c0_i32_0 = arith.constant 0 : i32
    %c0_i32_1 = arith.constant 0 : i32
    return %c0_i32, %c0_i32_0 : i32, i32
  }
  func.func @transform_3(%arg0: i32) -> (i32, i32) {
    %c0_i32 = arith.constant 0 : i32
    %c0_i32_0 = arith.constant 0 : i32
    return %arg0, %c0_i32 : i32, i32
  }
}

</mosaic_0001>

<bundles_post_ra>
// kernel: tpu_custom_call.1
= control target key start
LH: loop header
LB: loop body
LE: loop exit
PB: predicated region body
PF: predicated region fallthrough
CT: control target
= control target key end

     0   :  { %8 = vsyncpa [#allocation3], 0  ;;  %s224_s0 = inlined_call_operand.hbm [shape: f32[16,128], index: 0, kind: input, shape index: {}]   ;;  %s225_s1 = inlined_call_operand.vmem [shape: f32[1,128], index: 1, kind: input, shape index: {}]   ;;  %s226_s2 = inlined_call_operand.vmem [shape: f32[1,128], index: 2, kind: input, shape index: {}]   ;;  %s227_s3 = inlined_call_operand.hbm [shape: bf16[16,128], index: 3, kind: output, shape index: {}]  }
   0x1   :  { %9 = vsyncpa [#allocation4], 0  ;;  %s168_s12 = smov [#allocation2]   ;;  %s120_s16 = scalar_lea.hbm %s224_s0, 256 }
   0x2   :  { %s15_s13 = sshll.u32 %s168_s12, 4  ;;  %p121_p0 = scmp.ne.s32.totalorder %s224_s0, %s120_s16  ;;  %s16_s13 = int_to_ptr.vmem [resolvable:$true] %s15_s13 }
   0x3   :  { %p124_p1 = scmp.lt.u32.totalorder %s120_s16, %s224_s0 }
   0x5   :  { %p126_p2 = pnand %p124_p1, %p121_p0 }
   0x7   :  { %129 = shalt.err (!%p126_p2)
}
   0x8   :  { %s130_s21 = scalar_lea.vmem %s16_s13, 256  ;;  %p135_p4 = scmp.lt.s32.totalorder %s16_s13, %s16_s13 }
   0x9   :  { %p131_p3 = scmp.ne.s32.totalorder %s16_s13, %s130_s21  ;;  %p136_p5 = scmp.lt.s32.totalorder %s130_s21, %s130_s21 }
   0xb   :  { %p137_p6 = por %p136_p5, %p135_p4 }
   0xd   :  { %p138_p7 = pnand %p137_p6, %p131_p3 }
   0xf   :  { %141 = shalt.err (!%p138_p7)
}
  0x10   :  { %s169_s22 = smov 128   ;;  %s170_s23 = smov 8  }
  0x11   :  { %21 = dma.hbm_to_vmem [thread:$0]  %s224_s0, 256, %s16_s13, [#allocation3], %s169_s22, %s169_s22, %s170_s23  }
  0x12   :  { %164 = dma.done.wait [#allocation3], 256  }
  0x13   :  { %165 = vsyncadd [#allocation3], 4294967040  ;;  %v29_v0 = vld [vmem:[#allocation2] sm:$0xff]  ;;  %v30_v1 = vld [vmem:[#allocation2 + $0x8] sm:$0xff]  ;;  %s171_s29 = smov [#allocation5]  }
  0x14   :  { %31 = vadd.xlane.f32.xlu0 %v29_v0  ;;  %v99_v18 = vld [vmem:[%s225_s1] ss:$0 sm:$0xff]  ;;  %s87_s30 = sshll.u32 %s171_s29, 4  ;;  %s88_s30 = int_to_ptr.vmem [resolvable:$true] %s87_s30 }
  0x15   :  { %v100_v22 = vld [vmem:[%s226_s2] ss:$0 sm:$0xff]  ;;  %s142_s4 = scalar_lea.vmem %s88_s30, 128  ;;  %p147_p9 = scmp.lt.s32.totalorder %s88_s30, %s88_s30 }
  0x16   :  { %p143_p8 = scmp.ne.s32.totalorder %s88_s30, %s142_s4  ;;  %p148_p10 = scmp.lt.s32.totalorder %s142_s4, %s142_s4 }
  0x18   :  { %33 = vadd.xlane.f32.xlu0 %v30_v1  ;;  %p149_p11 = por %p148_p10, %p147_p9 }
  0x1a   :  { %p150_p12 = pnand %p149_p11, %p143_p8 }
  0xa1   :  { %v32_v2 = vpop.xlane.xlu0 %31 }
  0xa2   :  { %v36_v3 = vmul.f32 0.0078125, %v32_v2 }
  0xa4   :  { %v38_v4 = vsub.f32 %v29_v0, %v36_v3 }
  0xa5   :  { %v34_v5 = vpop.xlane.xlu0 %33 }
  0xa6   :  { %v37_v6 = vmul.f32 0.0078125, %v34_v5  ;;  %v40_v7 = vmul.f32 %v38_v4, %v38_v4 }
  0xa8   :  { %v39_v8 = vsub.f32 %v30_v1, %v37_v6  ;;  %42 = vadd.xlane.f32.xlu1 %v40_v7 }
  0xaa   :  { %v41_v9 = vmul.f32 %v39_v8, %v39_v8 }
  0xac   :  { %44 = vadd.xlane.f32.xlu1 %v41_v9 }
 0x135   :  { %v43_v10 = vpop.xlane.xlu1 %42 }
 0x136   :  { %v46_v11 = vmul.f32 0.0078125, %v43_v10 }
 0x138   :  { %v48_v12 = vadd.f32 1e-12, %v46_v11 }
 0x139   :  { %v45_v13 = vpop.xlane.xlu1 %44 }
 0x13a   :  { %116 = vrsqrt.f32 %v48_v12  ;;  %v47_v14 = vmul.f32 0.0078125, %v45_v13 }
 0x13c   :  { %v49_v15 = vadd.f32 1e-12, %v47_v14 }
 0x13e   :  { %118 = vrsqrt.f32 %v49_v15 }
 0x144   :  { %v117_v16 = vpop.eup %116 }
 0x145   :  { %v52_v17 = vmul.f32 %v117_v16, %v38_v4 }
 0x147   :  { %v61_v21 = vmul.f32 %v99_v18, %v52_v17 }
 0x148   :  { %v119_v19 = vpop.eup %118 }
 0x149   :  { %v53_v20 = vmul.f32 %v119_v19, %v39_v8  ;;  %v70_v24 = vadd.f32 %v100_v22, %v61_v21 }
 0x14b   :  { %v62_v23 = vmul.f32 %v99_v18, %v53_v20 }
 0x14d   :  { %v71_v25 = vadd.f32 %v100_v22, %v62_v23 }
 0x14f   :  { %v108_v26 = vpack.c.bf16 %v71_v25, %v70_v24 }
 0x151   :  { %109 = vst [vmem:[#allocation5] sm:$0xff] %v108_v26  }
 0x152   :  { %153 = shalt.err (!%p150_p12)
}
 0x153   :  { %s154_s6 = scalar_lea.hbm %s227_s3, 128 }
 0x154   :  { %p155_p13 = scmp.ne.s32.totalorder %s227_s3, %s154_s6  ;;  %p158_p0 = scmp.lt.u32.totalorder %s154_s6, %s227_s3 }
 0x156   :  { %p160_p1 = pnand %p158_p0, %p155_p13 }
 0x158   :  { %163 = shalt.err (!%p160_p1)
}
 0x159   :  { %s172_s10 = smov 64   ;;  %s173_s11 = smov 4  }
 0x15a   :  { %93 = dma.vmem_to_hbm [thread:$0]  %s88_s30, 128, %s227_s3, [#allocation4], %s172_s10, %s172_s10, %s173_s11  }
 0x15b   :  { %166 = dma.done.wait [#allocation4], 128  }
 0x15c   :  { %167 = vsyncadd [#allocation4], 4294967168 }
 0x15d   :  { %97 = vsyncpa [#allocation3], 1 }
 0x15e   :  { %98 = vsyncpa [#allocation4], 1 }

</bundles_post_ra>
